<compile_context>
chip_gen: v7x
topology: tpu7x:2x2x1
jax: 0.10.0
libtpu: 0.0.40
codegen_flags: <defaults>
</compile_context>

<pallas_src>
import functools
import math

import jax
import jax.numpy as jnp
from jax.experimental import pallas as pl
from jax.experimental.pallas import tpu as pltpu

BN_EPS = 1e-5
KBLOCK_WEIGHT_BYTES = 4 * 1024 * 1024   # K-block only when the bf16 weight exceeds this
KBLOCK_TK = 512                         # 256-aligned K tile (v6e/v7x MXU) when K-blocking


def _round_up(x, m):
    return ((x + m - 1) // m) * m


def _round_up_cout(cout):
    # Lane-dense output stores; align to 256 (full v6e/v7x MXU pass) once the channel
    # count is large enough that the extra padding is amortized.
    return _round_up(cout, 256) if cout > 128 else _round_up(cout, 128)


def _pick_tile_m(m):
    """Row tile: as large as possible (<=512) but preferring >= 2 tiles so the
    'parallel' M axis can be split across v7x's two TensorCores."""
    for tm in (512, 384, 256, 128, 64, 32, 16, 8):
        if m % tm == 0 and m // tm >= 2:
            return tm, m
    for tm in (512, 256, 128, 64, 32, 16, 8):
        if m % tm == 0:
            return tm, m
    tm = min(256, _round_up(m, 8))
    return tm, _round_up(m, tm)          # rare fallback: pad M


def _vmem_limit_bytes(working_set_bytes):
    """Generation-aware VMEM limit: actual need (x2 headroom) clamped to 3/4 of this
    chip's physical VMEM (64 MiB on v7x, 128 MiB on v5e/v6e)."""
    try:
        cap = int(getattr(pltpu.get_tpu_info(), "vmem_capacity_bytes", 64 << 20))
    except Exception:
        cap = 64 << 20
    want = max(32 << 20, 2 * working_set_bytes + (4 << 20))
    return int(min(want, (cap * 3) // 4))


# ---------------------------------------------------------------------------
# Pallas kernels: MXU matmul with fused bias (+ReLU) epilogue, bf16 in/out
# ---------------------------------------------------------------------------
def _mm_bias_act_kernel(a_ref, w_ref, b_ref, o_ref, *, apply_relu):
    """out = A @ W + b (optional ReLU).  bf16 tiles in, f32 MXU accumulate, bf16 out."""
    acc = jnp.dot(a_ref[...], w_ref[...], preferred_element_type=jnp.float32)
    acc = acc + b_ref[...]
    if apply_relu:
        acc = jnp.maximum(acc, 0.0)
    o_ref[...] = acc.astype(o_ref.dtype)


def _mm_bias_act_kblocked_kernel(a_ref, w_ref, b_ref, o_ref, acc_ref, *, apply_relu):
    """K-blocked variant -- only used when the weight tile is too big to keep resident."""
    k = pl.program_id(1)

    @pl.when(k == 0)
    def _():
        acc_ref[...] = jnp.zeros_like(acc_ref)

    acc_ref[...] += jnp.dot(a_ref[...], w_ref[...], preferred_element_type=jnp.float32)

    @pl.when(k == pl.num_programs(1) - 1)
    def _():
        out = acc_ref[...] + b_ref[...]
        if apply_relu:
            out = jnp.maximum(out, 0.0)
        o_ref[...] = out.astype(o_ref.dtype)


def fused_matmul_bias_relu(patches, wmat, bias, *, apply_relu=True):
    """(M, K) @ (K, Coutp) + bias, optional ReLU.

    patches / wmat: bf16.  bias: f32 (1, cout).  Output: bf16 (M, Coutp).
    K is not padded (full-K blocks); Coutp is a multiple of 128 (lane-dense stores).
    """
    m, k = patches.shape
    kw_, coutp = wmat.shape
    assert kw_ == k and coutp % 128 == 0

    tm, mp = _pick_tile_m(m)
    if mp != m:                                      # rare: no MXU-friendly divisor of M
        patches = jnp.pad(patches, ((0, mp - m), (0, 0)))

    # Bias is stored un-padded so the real Cout stays recoverable from array shapes;
    # padding this (1, Coutp) f32 row costs a few hundred bytes, not an HBM pass.
    b = jnp.pad(bias, ((0, 0), (0, coutp - bias.shape[1]))).astype(jnp.float32)

    if k * coutp * 2 <= KBLOCK_WEIGHT_BYTES:
        # Single-shot: no K grid axis; constant weight/bias index_maps keep them
        # VMEM-resident (DMA'd once) across every M tile.
        need = 2 * (tm * k * 2 + k * coutp * 2 + coutp * 4 + tm * coutp * 2)
        out = pl.pallas_call(
            functools.partial(_mm_bias_act_kernel, apply_relu=apply_relu),
            out_shape=jax.ShapeDtypeStruct((mp, coutp), jnp.bfloat16),
            grid=(mp // tm,),
            in_specs=[
                pl.BlockSpec((tm, k), lambda i: (i, 0)),
                pl.BlockSpec((k, coutp), lambda i: (0, 0)),
                pl.BlockSpec((1, coutp), lambda i: (0, 0)),
            ],
            out_specs=pl.BlockSpec((tm, coutp), lambda i: (i, 0)),
            compiler_params=pltpu.CompilerParams(
                dimension_semantics=("parallel",),
                vmem_limit_bytes=_vmem_limit_bytes(need),
            ),
        )(patches, wmat, b)
    else:
        # Large K only: stream K in 256-aligned tiles with an f32 VMEM accumulator.
        tk = KBLOCK_TK
        kp = _round_up(k, tk)
        if kp != k:
            patches = jnp.pad(patches, ((0, 0), (0, kp - k)))
            wmat = jnp.pad(wmat, ((0, kp - k), (0, 0)))
        need = (2 * (tm * tk * 2 + tk * coutp * 2 + coutp * 4 + tm * coutp * 2)
                + tm * coutp * 4)
        out = pl.pallas_call(
            functools.partial(_mm_bias_act_kblocked_kernel, apply_relu=apply_relu),
            out_shape=jax.ShapeDtypeStruct((mp, coutp), jnp.bfloat16),
            grid=(mp // tm, kp // tk),
            in_specs=[
                pl.BlockSpec((tm, tk), lambda i, kk: (i, kk)),
                pl.BlockSpec((tk, coutp), lambda i, kk: (kk, 0)),
                pl.BlockSpec((1, coutp), lambda i, kk: (0, 0)),
            ],
            out_specs=pl.BlockSpec((tm, coutp), lambda i, kk: (i, 0)),
            scratch_shapes=[pltpu.VMEM((tm, coutp), jnp.float32)],
            compiler_params=pltpu.CompilerParams(
                dimension_semantics=("parallel", "arbitrary"),
                vmem_limit_bytes=_vmem_limit_bytes(need),
            ),
        )(patches, wmat, b)

    return out if mp == m else out[:m]


# ---------------------------------------------------------------------------
# Conv layer glue: single bf16 im2col + fused matmul
# ---------------------------------------------------------------------------
def conv3x3_bn_relu(x, wmat, bias):
    """One Conv2d(3x3, s1, p1) + folded eval-mode BN + ReLU.

    x: (N, H, W, C>=cin) NHWC bf16 (extra lane-padding channels are ignored).
    wmat: (9*cin, Coutp) bf16 pre-packed weight.  bias: (1, cout) f32.
    Returns (N, H, W, Coutp) bf16 (lane-dense; channels >= cout are zero).
    """
    n, h, w = x.shape[:3]
    cin = wmat.shape[0] // 9
    # Single bf16 im2col materialization: channel slice + spatial pad + 9-tap gather
    # fuse into one XLA copy producing the (M, 9*cin) patch matrix (no pad/convert
    # re-copies afterwards).
    xp = jnp.pad(x[..., :cin], ((0, 0), (1, 1), (1, 1), (0, 0)))
    taps = [xp[:, i:i + h, j:j + w, :] for i in range(3) for j in range(3)]
    patches = jnp.concatenate(taps, axis=-1).reshape(n * h * w, 9 * cin)
    out = fused_matmul_bias_relu(patches, wmat, bias, apply_relu=True)
    return out.reshape(n, h, w, wmat.shape[1])


# ---------------------------------------------------------------------------
# Parameters (PyTorch default Conv2d / BatchNorm2d init; BN folded; packed once)
# ---------------------------------------------------------------------------
def _conv_init(key, cout, cin, k=3):
    fan_in = cin * k * k
    bound = 1.0 / math.sqrt(fan_in)
    kw_, kb_ = jax.random.split(key)
    w = jax.random.uniform(kw_, (cout, cin, k, k), jnp.float32, -bound, bound)
    b = jax.random.uniform(kb_, (cout,), jnp.float32, -bound, bound)
    return w, b


def _bn_default(c):
    return (jnp.ones((c,), jnp.float32), jnp.zeros((c,), jnp.float32),
            jnp.zeros((c,), jnp.float32), jnp.ones((c,), jnp.float32))


def fold_conv_bn(w, b, gamma, beta, mean, var, eps=BN_EPS):
    """Fold eval-mode BN into the conv: y = (w*s) conv x + (beta + s*(b - mean))."""
    scale = gamma / jnp.sqrt(var + eps)
    return w * scale[:, None, None, None], beta + scale * (b - mean)


def _pack_layer(w_eff, b_eff):
    """One-time packing: (Cout,Cin,3,3) -> (9*Cin, Coutp) bf16; K order (kh, kw, cin)."""
    cout, cin = w_eff.shape[0], w_eff.shape[1]
    coutp = _round_up_cout(cout)
    wmat = jnp.transpose(w_eff, (2, 3, 1, 0)).reshape(9 * cin, cout)
    wmat = jnp.pad(wmat, ((0, 0), (0, coutp - cout))).astype(jnp.bfloat16)
    return {"wmat": wmat, "bias": b_eff.reshape(1, cout).astype(jnp.float32)}


def make_conv_block_params(key, ch_in, ch_out):
    k1, k2 = jax.random.split(key)
    w1, b1 = _conv_init(k1, ch_out, ch_in)
    w2, b2 = _conv_init(k2, ch_out, ch_out)
    w1e, b1e = fold_conv_bn(w1, b1, *_bn_default(ch_out))
    w2e, b2e = fold_conv_bn(w2, b2, *_bn_default(ch_out))
    params = {"l1": _pack_layer(w1e, b1e), "l2": _pack_layer(w2e, b2e)}
    ref = {"w1": w1e, "b1": b1e, "w2": w2e, "b2": b2e}       # f32 reference copies
    return params, ref


# ---------------------------------------------------------------------------
# Forward pass (matches conv_block.forward) + f32 reference
# ---------------------------------------------------------------------------
def conv_block_forward(x_nchw, params):
    x = jnp.transpose(x_nchw, (0, 2, 3, 1)).astype(jnp.bfloat16)   # NCHW->NHWC, bf16 once
    x = conv3x3_bn_relu(x, params["l1"]["wmat"], params["l1"]["bias"])
    x = conv3x3_bn_relu(x, params["l2"]["wmat"], params["l2"]["bias"])
    cout = params["l2"]["bias"].shape[1]
    x = x[..., :cout]                          # drop lane padding only at the very end
    return jnp.transpose(x, (0, 3, 1, 2)).astype(jnp.float32)      # f32 module boundary


def reference_forward(x_nchw, ref):
    """Pure-JAX f32 reference (lax.conv) of the same folded-BN conv block."""
    def layer(x, w, b):
        y = jax.lax.conv_general_dilated(
            x, w, window_strides=(1, 1), padding=((1, 1), (1, 1)),
            dimension_numbers=("NCHW", "OIHW", "NCHW"))
        return jnp.maximum(y + b[None, :, None, None], 0.0)
    return layer(layer(x_nchw, ref["w1"], ref["b1"]), ref["w2"], ref["b2"])


# ---------------------------------------------------------------------------
if __name__ == "__main__":
    key = jax.random.PRNGKey(0)
    kx, kp = jax.random.split(key)

    N, ch_in, ch_out, HW = 2, 4, 32, 16
    x = jax.random.normal(kx, (N, ch_in, HW, HW), dtype=jnp.float32)   # NCHW
    params, ref_w = make_conv_block_params(kp, ch_in, ch_out)

    out = jax.jit(conv_block_forward)(x, params)
    jax.block_until_ready(out)

    assert out.shape == (N, ch_out, HW, HW), out.shape
    assert bool(jnp.all(jnp.isfinite(out))), "non-finite output"

    # bf16 MXU inputs (f32 accumulate) => small deviation vs. the f32 reference.
    ref = reference_forward(x, ref_w)
    err = float(jnp.max(jnp.abs(out - ref)))
    assert err < 1e-1, f"max |pallas - reference| too large: {err}"

    print("KERNEL_OK")
</pallas_src>

<mosaic_0001>
module attributes {stable_mosaic.version = 11 : i64} {
  func.func @_mm_bias_act_kernel(%arg0: i32, %arg1: memref<256x36xbf16, #tpu.memory_space<vmem>>, %arg2: memref<36x128xbf16, #tpu.memory_space<vmem>>, %arg3: memref<1x128xf32, #tpu.memory_space<vmem>>, %arg4: memref<256x128xbf16, #tpu.memory_space<vmem>>) attributes {dimension_semantics = [#tpu.dimension_semantics<parallel>], iteration_bounds = array<i64: 2>, scalar_prefetch = 0 : i64, scratch_operands = 0 : i64, tpu.core_type = #tpu.core_type<tc>, window_params = [{transform_indices = @transform_0, window_bounds = array<i64: 256, 36>}, {pipeline_mode = #tpu.pipeline_mode<synchronous>, transform_indices = @transform_1, window_bounds = array<i64: 36, 128>}, {pipeline_mode = #tpu.pipeline_mode<synchronous>, transform_indices = @transform_2, window_bounds = array<i64: 1, 128>}, {transform_indices = @transform_3, window_bounds = array<i64: 256, 128>}]} {
    %c0 = arith.constant 0 : index
    %c0_0 = arith.constant 0 : index
    %0 = vector.load %arg1[%c0, %c0_0] : memref<256x36xbf16, #tpu.memory_space<vmem>>, vector<256x36xbf16>
    %c0_1 = arith.constant 0 : index
    %c0_2 = arith.constant 0 : index
    %1 = vector.load %arg2[%c0_1, %c0_2] : memref<36x128xbf16, #tpu.memory_space<vmem>>, vector<36x128xbf16>
    %cst = arith.constant dense<0.000000e+00> : vector<256x128xf32>
    %2 = tpu.matmul %0, %1, %cst {dimension_numbers = #tpu.dot_dimension_numbers<[1], [0], [0], [1], [0, 0, 1, 1], [], []>} : vector<256x36xbf16>, vector<36x128xbf16>, vector<256x128xf32> -> vector<256x128xf32>
    %c0_3 = arith.constant 0 : index
    %c0_4 = arith.constant 0 : index
    %3 = vector.load %arg3[%c0_3, %c0_4] : memref<1x128xf32, #tpu.memory_space<vmem>>, vector<1x128xf32>
    %4 = vector.broadcast %3 : vector<1x128xf32> to vector<256x128xf32>
    %5 = arith.addf %2, %4 : vector<256x128xf32>
    %cst_5 = arith.constant 0.000000e+00 : f32
    %6 = vector.broadcast %cst_5 : f32 to vector<256x128xf32>
    %7 = arith.maximumf %5, %6 : vector<256x128xf32>
    %8 = arith.truncf %7 : vector<256x128xf32> to vector<256x128xbf16>
    %c0_6 = arith.constant 0 : index
    %c0_7 = arith.constant 0 : index
    %9 = vector.load %arg4[%c0_6, %c0_7] : memref<256x128xbf16, #tpu.memory_space<vmem>>, vector<256x128xbf16>
    tpu.vector_store %arg4[%c0_6, %c0_7], %8 {strides = array<i32>} : memref<256x128xbf16, #tpu.memory_space<vmem>>, vector<256x128xbf16>,
    return
  }
  func.func @transform_0(%arg0: i32) -> (i32, i32) {
    %c0_i32 = arith.constant 0 : i32
    %c0_i32_0 = arith.constant 0 : i32
    return %arg0, %c0_i32 : i32, i32
  }
  func.func @transform_1(%arg0: i32) -> (i32, i32) {
    %c0_i32 = arith.constant 0 : i32
    %c0_i32_0 = arith.constant 0 : i32
    %c0_i32_1 = arith.constant 0 : i32
    return %c0_i32, %c0_i32_0 : i32, i32
  }
  func.func @transform_2(%arg0: i32) -> (i32, i32) {
    %c0_i32 = arith.constant 0 : i32
    %c0_i32_0 = arith.constant 0 : i32
    %c0_i32_1 = arith.constant 0 : i32
    return %c0_i32, %c0_i32_0 : i32, i32
  }
  func.func @transform_3(%arg0: i32) -> (i32, i32) {
    %c0_i32 = arith.constant 0 : i32
    %c0_i32_0 = arith.constant 0 : i32
    return %arg0, %c0_i32 : i32, i32
  }
}

module attributes {stable_mosaic.version = 11 : i64} {
  func.func @_mm_bias_act_kernel(%arg0: i32, %arg1: memref<256x288xbf16, #tpu.memory_space<vmem>>, %arg2: memref<288x128xbf16, #tpu.memory_space<vmem>>, %arg3: memref<1x128xf32, #tpu.memory_space<vmem>>, %arg4: memref<256x128xbf16, #tpu.memory_space<vmem>>) attributes {dimension_semantics = [#tpu.dimension_semantics<parallel>], iteration_bounds = array<i64: 2>, scalar_prefetch = 0 : i64, scratch_operands = 0 : i64, tpu.core_type = #tpu.core_type<tc>, window_params = [{transform_indices = @transform_0, window_bounds = array<i64: 256, 288>}, {pipeline_mode = #tpu.pipeline_mode<synchronous>, transform_indices = @transform_1, window_bounds = array<i64: 288, 128>}, {pipeline_mode = #tpu.pipeline_mode<synchronous>, transform_indices = @transform_2, window_bounds = array<i64: 1, 128>}, {transform_indices = @transform_3, window_bounds = array<i64: 256, 128>}]} {
    %c0 = arith.constant 0 : index
    %c0_0 = arith.constant 0 : index
    %0 = vector.load %arg1[%c0, %c0_0] : memref<256x288xbf16, #tpu.memory_space<vmem>>, vector<256x288xbf16>
    %c0_1 = arith.constant 0 : index
    %c0_2 = arith.constant 0 : index
    %1 = vector.load %arg2[%c0_1, %c0_2] : memref<288x128xbf16, #tpu.memory_space<vmem>>, vector<288x128xbf16>
    %cst = arith.constant dense<0.000000e+00> : vector<256x128xf32>
    %2 = tpu.matmul %0, %1, %cst {dimension_numbers = #tpu.dot_dimension_numbers<[1], [0], [0], [1], [0, 0, 1, 1], [], []>} : vector<256x288xbf16>, vector<288x128xbf16>, vector<256x128xf32> -> vector<256x128xf32>
    %c0_3 = arith.constant 0 : index
    %c0_4 = arith.constant 0 : index
    %3 = vector.load %arg3[%c0_3, %c0_4] : memref<1x128xf32, #tpu.memory_space<vmem>>, vector<1x128xf32>
    %4 = vector.broadcast %3 : vector<1x128xf32> to vector<256x128xf32>
    %5 = arith.addf %2, %4 : vector<256x128xf32>
    %cst_5 = arith.constant 0.000000e+00 : f32
    %6 = vector.broadcast %cst_5 : f32 to vector<256x128xf32>
    %7 = arith.maximumf %5, %6 : vector<256x128xf32>
    %8 = arith.truncf %7 : vector<256x128xf32> to vector<256x128xbf16>
    %c0_6 = arith.constant 0 : index
    %c0_7 = arith.constant 0 : index
    %9 = vector.load %arg4[%c0_6, %c0_7] : memref<256x128xbf16, #tpu.memory_space<vmem>>, vector<256x128xbf16>
    tpu.vector_store %arg4[%c0_6, %c0_7], %8 {strides = array<i32>} : memref<256x128xbf16, #tpu.memory_space<vmem>>, vector<256x128xbf16>,
    return
  }
  func.func @transform_0(%arg0: i32) -> (i32, i32) {
    %c0_i32 = arith.constant 0 : i32
    %c0_i32_0 = arith.constant 0 : i32
    return %arg0, %c0_i32 : i32, i32
  }
  func.func @transform_1(%arg0: i32) -> (i32, i32) {
    %c0_i32 = arith.constant 0 : i32
    %c0_i32_0 = arith.constant 0 : i32
    %c0_i32_1 = arith.constant 0 : i32
    return %c0_i32, %c0_i32_0 : i32, i32
  }
  func.func @transform_2(%arg0: i32) -> (i32, i32) {
    %c0_i32 = arith.constant 0 : i32
    %c0_i32_0 = arith.constant 0 : i32
    %c0_i32_1 = arith.constant 0 : i32
    return %c0_i32, %c0_i32_0 : i32, i32
  }
  func.func @transform_3(%arg0: i32) -> (i32, i32) {
    %c0_i32 = arith.constant 0 : i32
    %c0_i32_0 = arith.constant 0 : i32
    return %arg0, %c0_i32 : i32, i32
  }
}

</mosaic_0001>

<bundles_post_ra>
// kernel: conv_block_forward.2
= control target key start
LH: loop header
LB: loop body
LE: loop exit
PB: predicated region body
PF: predicated region fallthrough
CT: control target
= control target key end

     0   :  { %s1102_s12 = smov 0   ;;  %s1224_s0 = inlined_call_operand.vmem [shape: bf16[512,36], index: 0, kind: input, shape index: {}]   ;;  %s1225_s1 = inlined_call_operand.vmem [shape: bf16[36,128], index: 1, kind: input, shape index: {}]   ;;  %s1226_s2 = inlined_call_operand.vmem [shape: f32[1,128], index: 2, kind: input, shape index: {}]   ;;  %s1227_s3 = inlined_call_operand.vmem [shape: bf16[512,128], index: 3, kind: output, shape index: {}]  }
   0x1 LB: > { %s776_s13 = sadd.s32 4294967295, %s1080_s12   ;;  %p780_p0 = scmp.ge.s32.totalorder %s1080_s12, 1  ;;  %s1080_s12 = sphi %s1102_s12, %s13_s12  }
   0x2   : > { %p138_p1 = scmp.lt.s32.totalorder %s1080_s12, 3 }
   0x4   : > { %p139_p2 = pnand %p780_p0, %p138_p1 }
   0x5   : > { %v1055_v0 = vld [vmem:[%s1225_s1] sm:$0xff] (!%p139_p2)   ;;  %v1056_v1 = vld [vmem:[%s1225_s1 + $0x8] sm:$0xff] (!%p139_p2)   ;;  %s781_s18 = sshll.u32 (!%p139_p2), %s776_s13, 5  ;;  %v1057_v2 = vld [vmem:[%s1225_s1 + $0x10] ss:$0 sps:$4 sm:$0x33] (!%p139_p2)  }
   0x6   : > { %142 = sbr.rel (%p139_p2) target bundleno = 265 (0x109), region = 32  ;;  %1001 = vmatprep.subr.bf16.mxu0 (!%p139_p2), %v1055_v0  ;;  %1039 = vmatprep.subr.bf16.mxu1 (!%p139_p2), %v1055_v0  ;;  %p163_p3 = scmp.lt.s32.totalorder (!%p139_p2), %s781_s18, 63  ;;  %vm363_vm0 = vcmask (!%p139_p2), 1041408   ;;  %vm314_vm1 = vcmask (!%p139_p2), 293888   ;;  %v1164_v20 = vld [vmem:[%s1226_s2] ss:$0 sm:$0xff] (!%p139_p2) }
   0x7   : > { %1002 = vmatpush3.bf16.msra.mxu0 (!%p139_p2), %v1055_v0  ;;  %1042 = vmatpush3.bf16.msra.mxu1 (!%p139_p2), %v1055_v0  ;;  %v365_v3 = vsel (!%p139_p2), %vm363_vm0, %v1057_v2, 0 }
   0x8   : > { %1003 = vmatprep.subr.bf16.mxu0 (!%p139_p2), %v1056_v1  ;;  %1040 = vmatprep.subr.bf16.mxu1 (!%p139_p2), %v1056_v1 }
   0xb   : > { %1004 = vmatpush3.bf16.msra.mxu0 (!%p139_p2), %v1056_v1  ;;  %1043 = vmatpush3.bf16.msra.mxu1 (!%p139_p2), %v1056_v1 }
   0xc   : > { %1045 = vmatprep.subr.msk.bf16.mxu0 (!%p139_p2), %vm363_vm0, %v1057_v2  ;;  %1046 = vmatprep.subr.msk.bf16.mxu1 (!%p139_p2), %vm363_vm0, %v1057_v2 }
   0xd   : > { %s1229_s18 = smov (!%p163_p3, %s781_s18), 63 }
   0xe   : > { %s782_s21 = sshll.u32 %s1229_s18, 2 }
   0xf   : > { %s1127_s24 = scalar_lea.vmem %s1224_s0, %s782_s21  ;;  %1006 = vmatpush3.bf16.msra.mxu0 %v365_v3  ;;  %1044 = vmatpush3.bf16.msra.mxu1 %v365_v3  ;;  %s1179_s29 = scalar_lea.vmem %s1227_s3, %s782_s21 }
  0x10   : > { %v1058_v4 = vld [vmem:[%s1127_s24] sm:$0xff]   ;;  %v1060_v6 = vld [vmem:[%s1127_s24 + $0x8] sm:$0xff]   ;;  %v1062_v8 = vld [vmem:[%s1127_s24 + $0x10] sm:$0xff]  }
  0x11   : > { %v1059_v5 = vld [vmem:[%s1127_s24 + $0x40] sm:$0xff]   ;;  %1007 = vmatprep.mubr.msk.bf16.mxu0 %vm314_vm1, %v1058_v4  ;;  %v1061_v7 = vld [vmem:[%s1127_s24 + $0x48] sm:$0xff]   ;;  %v1063_v9 = vld [vmem:[%s1127_s24 + $0x50] sm:$0xff]  }
  0x12   : > { %1023 = vmatprep.mubr.msk.bf16.mxu1 %vm314_vm1, %v1059_v5  ;;  %1008 = vmatmul.mubr.msk.bf16.vlgmr.msra.gmra.mrb[0].mxu0 %vm314_vm1, %v1060_v6  ;;  %v1064_v10 = vld [vmem:[%s1127_s24 + $0x18] sm:$0xff]   ;;  %v1066_v12 = vld [vmem:[%s1127_s24 + $0x20] sm:$0xff]   ;;  %v1068_v14 = vld [vmem:[%s1127_s24 + $0x28] sm:$0xff]  }
  0x13   : > { %1024 = vmatmul.mubr.msk.bf16.vlgmr.msra.gmra.mrb[0].mxu1 %vm314_vm1, %v1061_v7  ;;  %1011 = vmatprep.mubr.msk.bf16.mxu0 %vm314_vm1, %v1062_v8  ;;  %v1065_v11 = vld [vmem:[%s1127_s24 + $0x58] sm:$0xff]   ;;  %v1067_v13 = vld [vmem:[%s1127_s24 + $0x60] sm:$0xff]   ;;  %v1069_v15 = vld [vmem:[%s1127_s24 + $0x68] sm:$0xff]  }
  0x14   : > { %1027 = vmatprep.mubr.msk.bf16.mxu1 %vm314_vm1, %v1063_v9  ;;  %v1070_v16 = vld [vmem:[%s1127_s24 + $0x30] sm:$0xff]   ;;  %v1072_v18 = vld [vmem:[%s1127_s24 + $0x38] sm:$0xff]  }
  0x15   : > { %v1071_v17 = vld [vmem:[%s1127_s24 + $0x70] sm:$0xff]   ;;  %v1073_v19 = vld [vmem:[%s1127_s24 + $0x78] sm:$0xff]  }
  0x1a   : > { %1012 = vmatmul.mubr.msk.bf16.gmra.mrb[4].mxu0 %vm314_vm1, %v1064_v10 }
  0x1b   : > { %1028 = vmatmul.mubr.msk.bf16.gmra.mrb[4].mxu1 %vm314_vm1, %v1065_v11  ;;  %1015 = vmatprep.mubr.msk.bf16.mxu0 %vm314_vm1, %v1066_v12 }
  0x1c   : > { %1031 = vmatprep.mubr.msk.bf16.mxu1 %vm314_vm1, %v1067_v13 }
  0x22   : > { %1016 = vmatmul.mubr.msk.bf16.gmra.mrb[8].mxu0 %vm314_vm1, %v1068_v14 }
  0x23   : > { %1032 = vmatmul.mubr.msk.bf16.gmra.mrb[8].mxu1 %vm314_vm1, %v1069_v15  ;;  %1019 = vmatprep.mubr.msk.bf16.mxu0 %vm314_vm1, %v1070_v16 }
  0x24   : > { %1035 = vmatprep.mubr.msk.bf16.mxu1 %vm314_vm1, %v1071_v17 }
  0x2a   : > { %1020 = vmatmul.mubr.msk.bf16.gmra.mrb[12].mxu0 %vm314_vm1, %v1072_v18 }
  0x2b   : > { %1036 = vmatmul.mubr.msk.bf16.gmra.mrb[12].mxu1 %vm314_vm1, %v1073_v19 }
  0xe5   : > { %v1009_v21 = vpop.f32.mrb[0].mxu0 }
  0xe6   : > { %v1025_v22 = vpop.f32.mrb[0].mxu1  ;;  %v410_v23 = vadd.f32 %v1009_v21, %v1164_v20  ;;  %v401_v25 = vpop.f32.mrb[1].mxu0 }
  0xe7   : > { %v474_v24 = vadd.f32 %v1025_v22, %v1164_v20  ;;  %v465_v26 = vpop.f32.mrb[1].mxu1  ;;  %v402_v27 = vadd.f32 %v1164_v20, %v401_v25  ;;  %v1010_v29 = vpop.f32.mrb[2].mxu0 }
  0xe8   : > { %v466_v28 = vadd.f32 %v1164_v20, %v465_v26  ;;  %v1026_v30 = vpop.f32.mrb[2].mxu1  ;;  %v413_v31 = vadd.f32 %v1010_v29, %v1164_v20  ;;  %v404_v33 = vpop.f32.mrb[3].mxu0  ;;  %v530_v37 = vmax.f32 %v410_v23, 0.0 }
  0xe9   : > { %v477_v32 = vadd.f32 %v1026_v30, %v1164_v20  ;;  %v468_v34 = vpop.f32.mrb[3].mxu1  ;;  %v405_v35 = vadd.f32 %v1164_v20, %v404_v33  ;;  %v546_v38 = vmax.f32 %v474_v24, 0.0  ;;  %v528_v41 = vmax.f32 %v402_v27, 0.0 }
  0xea   : > { %v469_v36 = vadd.f32 %v1164_v20, %v468_v34  ;;  %v531_v39 = vmax.f32 %v413_v31, 0.0  ;;  %v544_v42 = vmax.f32 %v466_v28, 0.0 }
  0xeb   : > { %v547_v40 = vmax.f32 %v477_v32, 0.0  ;;  %v529_v43 = vmax.f32 %v405_v35, 0.0 }
  0xec   : > { %v545_v44 = vmax.f32 %v469_v36, 0.0  ;;  %v895_v45 = vpack.c.bf16 %v531_v39, %v530_v37 }
  0xed   : > { %v935_v46 = vpack.c.bf16 %v547_v40, %v546_v38  ;;  %v890_v47 = vpack.c.bf16 %v529_v43, %v528_v41  ;;  %v1013_v49 = vpop.f32.mrb[4].mxu0 }
  0xee   : > { %v930_v48 = vpack.c.bf16 %v545_v44, %v544_v42  ;;  %v1029_v50 = vpop.f32.mrb[4].mxu1  ;;  %967 = vst [vmem:[%s1179_s29 + $0x8] sm:$0xff] %v895_v45   ;;  %v426_v51 = vadd.f32 %v1013_v49, %v1164_v20  ;;  %v417_v53 = vpop.f32.mrb[5].mxu0 }
  0xef   : > { %975 = vst [vmem:[%s1179_s29 + $0x48] sm:$0xff] %v935_v46   ;;  %v490_v52 = vadd.f32 %v1029_v50, %v1164_v20  ;;  %v481_v54 = vpop.f32.mrb[5].mxu1  ;;  %891 = vst [vmem:[%s1179_s29] sm:$0xff] %v890_v47   ;;  %v418_v55 = vadd.f32 %v1164_v20, %v417_v53  ;;  %v1014_v57 = vpop.f32.mrb[6].mxu0 }
  0xf0   : > { %974 = vst [vmem:[%s1179_s29 + $0x40] sm:$0xff] %v930_v48   ;;  %v482_v56 = vadd.f32 %v1164_v20, %v481_v54  ;;  %v1030_v58 = vpop.f32.mrb[6].mxu1  ;;  %v429_v59 = vadd.f32 %v1014_v57, %v1164_v20  ;;  %v420_v61 = vpop.f32.mrb[7].mxu0  ;;  %v534_v1 = vmax.f32 %v426_v51, 0.0 }
  0xf1   : > { %v493_v60 = vadd.f32 %v1030_v58, %v1164_v20  ;;  %v484_v62 = vpop.f32.mrb[7].mxu1  ;;  %v421_v63 = vadd.f32 %v1164_v20, %v420_v61  ;;  %v550_v2 = vmax.f32 %v490_v52, 0.0  ;;  %v532_v5 = vmax.f32 %v418_v55, 0.0 }
  0xf2   : > { %v485_v0 = vadd.f32 %v1164_v20, %v484_v62  ;;  %v535_v3 = vmax.f32 %v429_v59, 0.0  ;;  %v548_v6 = vmax.f32 %v482_v56, 0.0 }
  0xf3   : > { %v551_v4 = vmax.f32 %v493_v60, 0.0  ;;  %v533_v7 = vmax.f32 %v421_v63, 0.0 }
  0xf4   : > { %v549_v8 = vmax.f32 %v485_v0, 0.0  ;;  %v905_v9 = vpack.c.bf16 %v535_v3, %v534_v1 }
  0xf5   : > { %v945_v10 = vpack.c.bf16 %v551_v4, %v550_v2  ;;  %v900_v11 = vpack.c.bf16 %v533_v7, %v532_v5  ;;  %v1017_v13 = vpop.f32.mrb[8].mxu0 }
  0xf6   : > { %v940_v12 = vpack.c.bf16 %v549_v8, %v548_v6  ;;  %v1033_v14 = vpop.f32.mrb[8].mxu1  ;;  %969 = vst [vmem:[%s1179_s29 + $0x18] sm:$0xff] %v905_v9   ;;  %v442_v15 = vadd.f32 %v1017_v13, %v1164_v20  ;;  %v433_v17 = vpop.f32.mrb[9].mxu0 }
  0xf7   : > { %977 = vst [vmem:[%s1179_s29 + $0x58] sm:$0xff] %v945_v10   ;;  %v506_v16 = vadd.f32 %v1033_v14, %v1164_v20  ;;  %v497_v18 = vpop.f32.mrb[9].mxu1  ;;  %968 = vst [vmem:[%s1179_s29 + $0x10] sm:$0xff] %v900_v11   ;;  %v434_v19 = vadd.f32 %v1164_v20, %v433_v17  ;;  %v1018_v22 = vpop.f32.mrb[10].mxu0 }
  0xf8   : > { %976 = vst [vmem:[%s1179_s29 + $0x50] sm:$0xff] %v940_v12   ;;  %v498_v21 = vadd.f32 %v1164_v20, %v497_v18  ;;  %v1034_v23 = vpop.f32.mrb[10].mxu1  ;;  %v445_v24 = vadd.f32 %v1018_v22, %v1164_v20  ;;  %v436_v26 = vpop.f32.mrb[11].mxu0  ;;  %v538_v30 = vmax.f32 %v442_v15, 0.0 }
  0xf9   : > { %v509_v25 = vadd.f32 %v1034_v23, %v1164_v20  ;;  %v500_v27 = vpop.f32.mrb[11].mxu1  ;;  %v437_v28 = vadd.f32 %v1164_v20, %v436_v26  ;;  %v554_v31 = vmax.f32 %v506_v16, 0.0  ;;  %v536_v34 = vmax.f32 %v434_v19, 0.0 }
  0xfa   : > { %v501_v29 = vadd.f32 %v1164_v20, %v500_v27  ;;  %v539_v32 = vmax.f32 %v445_v24, 0.0  ;;  %v552_v35 = vmax.f32 %v498_v21, 0.0 }
  0xfb   : > { %v555_v33 = vmax.f32 %v509_v25, 0.0  ;;  %v537_v36 = vmax.f32 %v437_v28, 0.0 }
  0xfc   : > { %v553_v37 = vmax.f32 %v501_v29, 0.0  ;;  %v915_v38 = vpack.c.bf16 %v539_v32, %v538_v30 }
  0xfd   : > { %v955_v39 = vpack.c.bf16 %v555_v33, %v554_v31  ;;  %v910_v40 = vpack.c.bf16 %v537_v36, %v536_v34  ;;  %v1021_v42 = vpop.f32.mrb[12].mxu0 }
  0xfe   : > { %v950_v41 = vpack.c.bf16 %v553_v37, %v552_v35  ;;  %v1037_v43 = vpop.f32.mrb[12].mxu1  ;;  %971 = vst [vmem:[%s1179_s29 + $0x28] sm:$0xff] %v915_v38   ;;  %v458_v44 = vadd.f32 %v1021_v42, %v1164_v20  ;;  %v449_v46 = vpop.f32.mrb[13].mxu0 }
  0xff   : > { %979 = vst [vmem:[%s1179_s29 + $0x68] sm:$0xff] %v955_v39   ;;  %v522_v45 = vadd.f32 %v1037_v43, %v1164_v20  ;;  %v513_v47 = vpop.f32.mrb[13].mxu1  ;;  %970 = vst [vmem:[%s1179_s29 + $0x20] sm:$0xff] %v910_v40   ;;  %v450_v48 = vadd.f32 %v1164_v20, %v449_v46  ;;  %v1022_v50 = vpop.f32.mrb[14].mxu0 }
 0x100   : > { %978 = vst [vmem:[%s1179_s29 + $0x60] sm:$0xff] %v950_v41   ;;  %v514_v49 = vadd.f32 %v1164_v20, %v513_v47  ;;  %v1038_v51 = vpop.f32.mrb[14].mxu1  ;;  %v461_v52 = vadd.f32 %v1022_v50, %v1164_v20  ;;  %v452_v54 = vpop.f32.mrb[15].mxu0  ;;  %v542_v58 = vmax.f32 %v458_v44, 0.0 }
 0x101   : > { %v525_v53 = vadd.f32 %v1038_v51, %v1164_v20  ;;  %v516_v55 = vpop.f32.mrb[15].mxu1  ;;  %v453_v56 = vadd.f32 %v1164_v20, %v452_v54  ;;  %v558_v59 = vmax.f32 %v522_v45, 0.0  ;;  %v540_v62 = vmax.f32 %v450_v48, 0.0 }
 0x102   : > { %v517_v57 = vadd.f32 %v1164_v20, %v516_v55  ;;  %v543_v60 = vmax.f32 %v461_v52, 0.0  ;;  %v556_v63 = vmax.f32 %v514_v49, 0.0 }
 0x103   : > { %v559_v61 = vmax.f32 %v525_v53, 0.0  ;;  %v541_v0 = vmax.f32 %v453_v56, 0.0 }
 0x104   : > { %v557_v1 = vmax.f32 %v517_v57, 0.0  ;;  %v925_v2 = vpack.c.bf16 %v543_v60, %v542_v58 }
 0x105   : > { %v965_v3 = vpack.c.bf16 %v559_v61, %v558_v59  ;;  %v920_v4 = vpack.c.bf16 %v541_v0, %v540_v62 }
 0x106   : > { %v960_v5 = vpack.c.bf16 %v557_v1, %v556_v63  ;;  %973 = vst [vmem:[%s1179_s29 + $0x38] sm:$0xff] %v925_v2  }
 0x107   : > { %981 = vst [vmem:[%s1179_s29 + $0x78] sm:$0xff] %v965_v3   ;;  %972 = vst [vmem:[%s1179_s29 + $0x30] sm:$0xff] %v920_v4  }
 0x108   : > { %980 = vst [vmem:[%s1179_s29 + $0x70] sm:$0xff] %v960_v5  }
 0x109 PF: > { %s13_s12 = sadd.s32 1, %s1080_s12  }
 0x10a   : > { %p10_p4 = scmp.ge.s32.totalorder %s13_s12, 4  }
 0x10c   :  { %12 = sbr.rel (!%p10_p4) target bundleno = 1 (0x1), region = 62 }

// kernel: conv_block_forward.3
= control target key start
LH: loop header
LB: loop body
LE: loop exit
PB: predicated region body
PF: predicated region fallthrough
CT: control target
= control target key end

     0   :  { %s1806_s12 = smov 0   ;;  %s2032_s0 = inlined_call_operand.vmem [shape: bf16[512,288], index: 0, kind: input, shape index: {}]   ;;  %s2033_s1 = inlined_call_operand.vmem [shape: bf16[288,128], index: 1, kind: input, shape index: {}]   ;;  %s2034_s2 = inlined_call_operand.vmem [shape: f32[1,128], index: 2, kind: input, shape index: {}]   ;;  %s2035_s3 = inlined_call_operand.vmem [shape: bf16[512,128], index: 3, kind: output, shape index: {}]  }
   0x1 LB: > { %s1252_s13 = sadd.s32 4294967295, %s1784_s12   ;;  %p1256_p0 = scmp.ge.s32.totalorder %s1784_s12, 1  ;;  %s1784_s12 = sphi %s1806_s12, %s13_s12  }
   0x2   : > { %p139_p1 = scmp.lt.s32.totalorder %s1784_s12, 3 }
   0x4   : > { %p140_p2 = pnand %p1256_p0, %p139_p1 }
   0x5   : > { %v1696_v0 = vld [vmem:[%s2033_s1 + $0x40] sm:$0xff] (!%p140_p2)   ;;  %s1257_s16 = sshll.u32 (!%p140_p2), %s1252_s13, 5  ;;  %v1698_v2 = vld [vmem:[%s2033_s1 + $0x48] sm:$0xff] (!%p140_p2)   ;;  %v1700_v4 = vld [vmem:[%s2033_s1 + $0x50] sm:$0xff] (!%p140_p2)   ;;  %vm633_vm0 = vcmask (!%p140_p2), 261120  }
   0x6   : > { %143 = sbr.rel (%p140_p2) target bundleno = 352 (0x160), region = 32  ;;  %v1697_v1 = vld [vmem:[%s2033_s1] sm:$0xff] (!%p140_p2)   ;;  %1505 = vmatprep.subr.bf16.mxu0 (!%p140_p2), %v1696_v0  ;;  %1671 = vmatprep.subr.bf16.mxu1 (!%p140_p2), %v1696_v0  ;;  %p165_p3 = scmp.lt.s32.totalorder (!%p140_p2), %s1257_s16, 63  ;;  %v1699_v3 = vld [vmem:[%s2033_s1 + $0x8] sm:$0xff] (!%p140_p2)   ;;  %v1701_v5 = vld [vmem:[%s2033_s1 + $0x10] sm:$0xff] (!%p140_p2)  }
   0x7   : > { %1506 = vmatpush3.bf16.msra.mxu0 (!%p140_p2), %v1697_v1  ;;  %1679 = vmatpush3.bf16.msra.mxu1 (!%p140_p2), %v1697_v1  ;;  %v1702_v6 = vld [vmem:[%s2033_s1 + $0x58] sm:$0xff] (!%p140_p2)   ;;  %v1704_v8 = vld [vmem:[%s2033_s1 + $0x60] sm:$0xff] (!%p140_p2)   ;;  %v1706_v10 = vld [vmem:[%s2033_s1 + $0x68] sm:$0xff] (!%p140_p2)  }
   0x8   : > { %1507 = vmatprep.subr.bf16.mxu0 (!%p140_p2), %v1698_v2  ;;  %1672 = vmatprep.subr.bf16.mxu1 (!%p140_p2), %v1698_v2  ;;  %v1703_v7 = vld [vmem:[%s2033_s1 + $0x18] sm:$0xff] (!%p140_p2)   ;;  %v1705_v9 = vld [vmem:[%s2033_s1 + $0x20] sm:$0xff] (!%p140_p2)   ;;  %v1707_v13 = vld [vmem:[%s2033_s1 + $0x28] sm:$0xff] (!%p140_p2)  }
   0x9   : > { %v1708_v14 = vld [vmem:[%s2033_s1 + $0x70] sm:$0xff] (!%p140_p2)   ;;  %v1710_v16 = vld [vmem:[%s2033_s1 + $0x78] sm:$0xff] (!%p140_p2)   ;;  %v1718_v18 = vld [vmem:[%s2033_s1 + $0x80] sm:$0xff] (!%p140_p2)  }
   0xa   : > { %v1709_v15 = vld [vmem:[%s2033_s1 + $0x30] sm:$0xff] (!%p140_p2)   ;;  %v1711_v17 = vld [vmem:[%s2033_s1 + $0x38] sm:$0xff] (!%p140_p2)   ;;  %v1731_v23 = vld [vmem:[%s2033_s1 + $0x88] sm:$0xff] (!%p140_p2)  }
   0xb   : > { %1508 = vmatpush3.bf16.msra.mxu0 (!%p140_p2), %v1699_v3  ;;  %1680 = vmatpush3.bf16.msra.mxu1 (!%p140_p2), %v1699_v3 }
   0xc   : > { %1509 = vmatprep.subr.bf16.mxu0 (!%p140_p2), %v1700_v4  ;;  %1673 = vmatprep.subr.bf16.mxu1 (!%p140_p2), %v1700_v4 }
   0xd   : > { %s2037_s16 = smov (!%p165_p3, %s1257_s16), 63 }
   0xe   : > { %s1687_s29 = smul.u32 12, %s2037_s16  ;;  %s1260_s5 = sshll.u32 %s2037_s16, 2 }
   0xf   : > { %1510 = vmatpush3.bf16.msra.mxu0 %v1701_v5  ;;  %1681 = vmatpush3.bf16.msra.mxu1 %v1701_v5  ;;  %s1969_s8 = scalar_lea.vmem %s2035_s3, %s1260_s5 }
  0x10   : > { %1511 = vmatprep.subr.bf16.mxu0 %v1702_v6  ;;  %1674 = vmatprep.subr.bf16.mxu1 %v1702_v6  ;;  %s1847_s9 = scalar_lea.vmem %s2032_s0, %s1687_s29 }
  0x11   : > { %v1714_v11 = vld [vmem:[%s1847_s9 + $0x4] ss:$12 sps:$4 sm:$0xff]   ;;  %v1712_v19 = vld [vmem:[%s1847_s9] ss:$12 sps:$4 sm:$0xff]   ;;  %v1719_v21 = vld [vmem:[%s1847_s9 + $0x1c] ss:$12 sps:$4 sm:$0xff]  }
  0x12   : > { %v1717_v12 = vld [vmem:[%s1847_s9 + $0x124] ss:$12 sps:$4 sm:$0xff]   ;;  %714 = vmatprep.mubr.bf16.mxu0 %v1714_v11  ;;  %v1715_v20 = vld [vmem:[%s1847_s9 + $0x120] ss:$12 sps:$4 sm:$0xff]   ;;  %v1721_v22 = vld [vmem:[%s1847_s9 + $0x13c] ss:$12 sps:$4 sm:$0xff]  }
  0x13   : > { %1512 = vmatpush3.bf16.msra.mxu0 %v1703_v7  ;;  %1682 = vmatpush3.bf16.msra.mxu1 %v1703_v7  ;;  %v1723_v24 = vld [vmem:[%s1847_s9 + $0x18] ss:$12 sps:$4 sm:$0xff]   ;;  %v1725_v26 = vld [vmem:[%s1847_s9 + $0x34] ss:$12 sps:$4 sm:$0xff]   ;;  %v1729_v28 = vld [vmem:[%s1847_s9 + $0x30] ss:$12 sps:$4 sm:$0xff]  }
  0x14   : > { %1513 = vmatprep.subr.bf16.mxu0 %v1704_v8  ;;  %1675 = vmatprep.subr.bf16.mxu1 %v1704_v8  ;;  %v1724_v25 = vld [vmem:[%s1847_s9 + $0x138] ss:$12 sps:$4 sm:$0xff]   ;;  %v1727_v27 = vld [vmem:[%s1847_s9 + $0x154] ss:$12 sps:$4 sm:$0xff]   ;;  %v1730_v29 = vld [vmem:[%s1847_s9 + $0x150] ss:$12 sps:$4 sm:$0xff]  }
  0x15   : > { %810 = vmatprep.mubr.bf16.mxu1 %v1717_v12  ;;  %v1732_v30 = vld [vmem:[%s1847_s9 + $0x4c] ss:$12 sps:$4 sm:$0xff]   ;;  %v1736_v32 = vld [vmem:[%s1847_s9 + $0x48] ss:$12 sps:$4 sm:$0xff]   ;;  %v1738_v34 = vld [vmem:[%s1847_s9 + $0x64] ss:$12 sps:$4 sm:$0xff]  }
  0x16   : > { %v1734_v31 = vld [vmem:[%s1847_s9 + $0x16c] ss:$12 sps:$4 sm:$0xff]   ;;  %v1737_v33 = vld [vmem:[%s1847_s9 + $0x168] ss:$12 sps:$4 sm:$0xff]   ;;  %v1747_v41 = vld [vmem:[%s1847_s9 + $0x50] ss:$12 sps:$4 sm:$0xff]  }
  0x17   : > { %1514 = vmatpush3.bf16.msra.mxu0 %v1705_v9  ;;  %1683 = vmatpush3.bf16.msra.mxu1 %v1705_v9  ;;  %v1740_v35 = vld [vmem:[%s1847_s9 + $0x8] ss:$12 sps:$4 sm:$0xff]   ;;  %v1741_v36 = vld [vmem:[%s1847_s9 + $0x60] ss:$12 sps:$4 sm:$0xff]   ;;  %v1745_v39 = vld [vmem:[%s1847_s9 + $0x38] ss:$12 sps:$4 sm:$0xff]  }
  0x18   : > { %1515 = vmatprep.subr.bf16.mxu0 %v1706_v10  ;;  %1676 = vmatprep.subr.bf16.mxu1 %v1706_v10  ;;  %v1742_v37 = vld [vmem:[%s1847_s9 + $0x20] ss:$12 sps:$4 sm:$0xff]   ;;  %v1743_v38 = vld [vmem:[%s1847_s9 + $0x7c] ss:$12 sps:$4 sm:$0xff]   ;;  %v1746_v40 = vld [vmem:[%s1847_s9 + $0x78] ss:$12 sps:$4 sm:$0xff]  }
  0x19   : > { %v1748_v42 = vld [vmem:[%s1847_s9 + $0x94] ss:$12 sps:$4 sm:$0xff]   ;;  %v1751_v44 = vld [vmem:[%s1847_s9 + $0x90] ss:$12 sps:$4 sm:$0xff]   ;;  %v1753_v46 = vld [vmem:[%s1847_s9 + $0xac] ss:$12 sps:$4 sm:$0xff]  }
  0x1a   : > { %v1750_v43 = vld [vmem:[%s1847_s9 + $0x68] ss:$12 sps:$4 sm:$0xff]   ;;  %v1752_v45 = vld [vmem:[%s1847_s9 + $0x80] ss:$12 sps:$4 sm:$0xff]   ;;  %v1755_v47 = vld [vmem:[%s1847_s9 + $0x98] ss:$12 sps:$4 sm:$0xff]  }
  0x1b   : > { %1516 = vmatpush3.bf16.msra.mxu0 %v1707_v13  ;;  %1684 = vmatpush3.bf16.msra.mxu1 %v1707_v13  ;;  %v1756_v48 = vld [vmem:[%s1847_s9 + $0xa8] ss:$12 sps:$4 sm:$0xff]   ;;  %v1757_v49 = vld [vmem:[%s1847_s9 + $0xb0] ss:$12 sps:$4 sm:$0xff]   ;;  %v1761_v52 = vld [vmem:[%s1847_s9 + $0xc0] ss:$12 sps:$4 sm:$0xff]  }
  0x1c   : > { %1517 = vmatprep.subr.bf16.mxu0 %v1708_v14  ;;  %1677 = vmatprep.subr.bf16.mxu1 %v1708_v14  ;;  %v1758_v50 = vld [vmem:[%s1847_s9 + $0xc4] ss:$12 sps:$4 sm:$0xff]   ;;  %v1760_v51 = vld [vmem:[%s1847_s9 + $0xc8] ss:$12 sps:$4 sm:$0xff]   ;;  %v1762_v53 = vld [vmem:[%s1847_s9 + $0xe0] ss:$12 sps:$4 sm:$0xff]  }
  0x1d   : > { %v1763_v54 = vld [vmem:[%s1847_s9 + $0xdc] ss:$12 sps:$4 sm:$0xff]   ;;  %v1765_v55 = vld [vmem:[%s1847_s9 + $0xf8] ss:$12 sps:$4 sm:$0xff]   ;;  %v1768_v58 = vld [vmem:[%s1847_s9 + $0xf4] ss:$12 sps:$4 sm:$0xff]  }
  0x1e   : > { %v1766_v56 = vld [vmem:[%s1847_s9 + $0xd8] ss:$12 sps:$4 sm:$0xff]   ;;  %v1767_v57 = vld [vmem:[%s1847_s9 + $0x110] ss:$12 sps:$4 sm:$0xff]   ;;  %v1770_v59 = vld [vmem:[%s1847_s9 + $0x128] ss:$12 sps:$4 sm:$0xff]  }
  0x1f   : > { %1518 = vmatpush3.bf16.msra.mxu0 %v1709_v15  ;;  %1685 = vmatpush3.bf16.msra.mxu1 %v1709_v15  ;;  %v1771_v60 = vld [vmem:[%s1847_s9 + $0xf0] ss:$12 sps:$4 sm:$0xff]   ;;  %v1772_v61 = vld [vmem:[%s1847_s9 + $0x140] ss:$12 sps:$4 sm:$0xff]   ;;  %v1775_v63 = vld [vmem:[%s1847_s9 + $0x158] ss:$12 sps:$4 sm:$0xff]  }
  0x20   : > { %1519 = vmatprep.subr.bf16.mxu0 %v1710_v16  ;;  %1678 = vmatprep.subr.bf16.mxu1 %v1710_v16  ;;  %v1773_v62 = vld [vmem:[%s1847_s9 + $0x10c] ss:$12 sps:$4 sm:$0xff]   ;;  %v1776_v0 = vld [vmem:[%s1847_s9 + $0x108] ss:$12 sps:$4 sm:$0xff]   ;;  %v1777_v1 = vld [vmem:[%s1847_s9 + $0x170] ss:$12 sps:$4 sm:$0xff]  }
  0x23   : > { %1520 = vmatpush3.bf16.msra.mxu0 %v1711_v17  ;;  %1686 = vmatpush3.bf16.msra.mxu1 %v1711_v17 }
  0x24   : > { %1635 = vmatprep.subr.bf16.mxu1 %v1718_v18 }
  0x26   : > { %715 = vmatmul.mubr.bf16.vlgmr.msra.gmra.mrb[0].mxu0 %v1712_v19  ;;  %811 = vmatmul.mubr.bf16.vlgmr.msra.gmra.mrb[0].mxu1 %v1715_v20 }
  0x27   : > { %1636 = vmatpush3.bf16.msra.mxu1 %v1718_v18  ;;  %722 = vmatprep.mubr.bf16.mxu0 %v1719_v21 }
  0x28   : > { %818 = vmatprep.mubr.bf16.mxu1 %v1721_v22  ;;  %1637 = vmatprep.subr.bf16.mxu1 %v1731_v23 }
  0x2b   : > { %1638 = vmatpush3.bf16.msra.mxu1 %v1731_v23 }
  0x2e   : > { %723 = vmatmul.mubr.bf16.gmra.mrb[4].mxu0 %v1723_v24  ;;  %819 = vmatmul.mubr.bf16.gmra.mrb[4].mxu1 %v1724_v25 }
  0x2f   : > { %730 = vmatprep.mubr.bf16.mxu0 %v1725_v26  ;;  %826 = vmatprep.mubr.bf16.mxu1 %v1727_v27 }
  0x36   : > { %731 = vmatmul.mubr.bf16.gmra.mrb[8].mxu0 %v1729_v28  ;;  %827 = vmatmul.mubr.bf16.gmra.mrb[8].mxu1 %v1730_v29 }
  0x37   : > { %738 = vmatprep.mubr.bf16.mxu0 %v1732_v30  ;;  %834 = vmatprep.mubr.bf16.mxu1 %v1734_v31 }
  0x3e   : > { %739 = vmatmul.mubr.bf16.gmra.mrb[12].mxu0 %v1736_v32  ;;  %835 = vmatmul.mubr.bf16.gmra.mrb[12].mxu1 %v1737_v33 }
  0x3f   : > { %746 = vmatprep.mubr.bf16.mxu0 %v1738_v34  ;;  %1639 = vmatprep.mubr.msk.bf16.mxu1 %vm633_vm0, %v1740_v35 }
  0x46   : > { %747 = vmatmul.mubr.bf16.gmra.mrb[16].mxu0 %v1741_v36  ;;  %1640 = vmatmul.mubr.msk.bf16.vlgmr.msra.gmra.mrb[16].mxu1 %vm633_vm0, %v1742_v37 }
  0x47   : > { %754 = vmatprep.mubr.bf16.mxu0 %v1743_v38  ;;  %1643 = vmatprep.mubr.msk.bf16.mxu1 %vm633_vm0, %v1745_v39 }
  0x4e   : > { %755 = vmatmul.mubr.bf16.gmra.mrb[20].mxu0 %v1746_v40  ;;  %1644 = vmatmul.mubr.msk.bf16.gmra.mrb[20].mxu1 %vm633_vm0, %v1747_v41 }
  0x4f   : > { %762 = vmatprep.mubr.bf16.mxu0 %v1748_v42  ;;  %1647 = vmatprep.mubr.msk.bf16.mxu1 %vm633_vm0, %v1750_v43 }
  0x56   : > { %763 = vmatmul.mubr.bf16.gmra.mrb[24].mxu0 %v1751_v44  ;;  %1648 = vmatmul.mubr.msk.bf16.gmra.mrb[24].mxu1 %vm633_vm0, %v1752_v45 }
  0x57   : > { %770 = vmatprep.mubr.bf16.mxu0 %v1753_v46  ;;  %1651 = vmatprep.mubr.msk.bf16.mxu1 %vm633_vm0, %v1755_v47 }
  0x5e   : > { %771 = vmatmul.mubr.bf16.gmra.mrb[28].mxu0 %v1756_v48  ;;  %1652 = vmatmul.mubr.msk.bf16.gmra.mrb[28].mxu1 %vm633_vm0, %v1757_v49 }
  0x5f   : > { %778 = vmatprep.mubr.bf16.mxu0 %v1758_v50  ;;  %1655 = vmatprep.mubr.msk.bf16.mxu1 %vm633_vm0, %v1760_v51  ;;  %v1959_v50 = vld [vmem:[%s2034_s2] ss:$0 sm:$0xff] }
  0x66   : > { %779 = vmatmul.mubr.bf16.gmra.mrb[32].mxu0 %v1761_v52  ;;  %1656 = vmatmul.mubr.msk.bf16.gmra.mrb[32].mxu1 %vm633_vm0, %v1762_v53 }
  0x67   : > { %786 = vmatprep.mubr.bf16.mxu0 %v1763_v54  ;;  %1659 = vmatprep.mubr.msk.bf16.mxu1 %vm633_vm0, %v1765_v55 }
  0x6e   : > { %787 = vmatmul.mubr.bf16.gmra.mrb[36].mxu0 %v1766_v56  ;;  %1660 = vmatmul.mubr.msk.bf16.gmra.mrb[36].mxu1 %vm633_vm0, %v1767_v57 }
  0x6f   : > { %794 = vmatprep.mubr.bf16.mxu0 %v1768_v58  ;;  %1663 = vmatprep.mubr.msk.bf16.mxu1 %vm633_vm0, %v1770_v59 }
  0x76   : > { %795 = vmatmul.mubr.bf16.gmra.mrb[40].mxu0 %v1771_v60  ;;  %1664 = vmatmul.mubr.msk.bf16.gmra.mrb[40].mxu1 %vm633_vm0, %v1772_v61 }
  0x77   : > { %802 = vmatprep.mubr.bf16.mxu0 %v1773_v62  ;;  %1667 = vmatprep.mubr.msk.bf16.mxu1 %vm633_vm0, %v1775_v63 }
  0x7e   : > { %803 = vmatmul.mubr.bf16.gmra.mrb[44].mxu0 %v1776_v0  ;;  %1668 = vmatmul.mubr.msk.bf16.gmra.mrb[44].mxu1 %vm633_vm0, %v1777_v1 }
  0xf9   : > { %v1521_v2 = vpop.f32.mrb[0].mxu0  ;;  %v1593_v3 = vpop.f32.mrb[0].mxu1 }
  0xfa   : > { %v1522_v4 = vpop.f32.mrb[1].mxu0  ;;  %v1594_v5 = vpop.f32.mrb[1].mxu1 }
  0xfb   : > { %v1523_v6 = vadd.f32 %v1522_v4, %v1521_v2  ;;  %v1524_v7 = vpop.f32.mrb[2].mxu0  ;;  %v1940_v8 = vadd.f32 %v1594_v5, %v1593_v3  ;;  %v1596_v9 = vpop.f32.mrb[2].mxu1 }
  0xfc   : > { %v1525_v10 = vpop.f32.mrb[3].mxu0  ;;  %v1597_v11 = vpop.f32.mrb[3].mxu1 }
  0xfd   : > { %v1526_v12 = vadd.f32 %v1525_v10, %v1524_v7  ;;  %v1942_v13 = vadd.f32 %v1597_v11, %v1596_v9  ;;  %v717_v54 = vadd.f32 %v1523_v6, %v1959_v50 }
  0xff   : > { %v720_v63 = vadd.f32 %v1526_v12, %v1959_v50 }
 0x101   : > { %v1527_v14 = vpop.f32.mrb[4].mxu0  ;;  %v1599_v15 = vpop.f32.mrb[4].mxu1 }
 0x102   : > { %v1528_v16 = vpop.f32.mrb[5].mxu0  ;;  %v1600_v17 = vpop.f32.mrb[5].mxu1 }
 0x103   : > { %v1529_v18 = vadd.f32 %v1528_v16, %v1527_v14  ;;  %v1530_v19 = vpop.f32.mrb[6].mxu0  ;;  %v1944_v20 = vadd.f32 %v1600_v17, %v1599_v15  ;;  %v1602_v21 = vpop.f32.mrb[6].mxu1 }
 0x104   : > { %v1531_v22 = vpop.f32.mrb[7].mxu0  ;;  %v1603_v23 = vpop.f32.mrb[7].mxu1 }
 0x105   : > { %v1532_v24 = vadd.f32 %v1531_v22, %v1530_v19  ;;  %v1946_v25 = vadd.f32 %v1603_v23, %v1602_v21  ;;  %v725_v51 = vadd.f32 %v1529_v18, %v1959_v50 }
 0x107   : > { %v728_v58 = vadd.f32 %v1532_v24, %v1959_v50 }
 0x109   : > { %v1533_v26 = vpop.f32.mrb[8].mxu0  ;;  %v1605_v27 = vpop.f32.mrb[8].mxu1 }
 0x10a   : > { %v1534_v28 = vpop.f32.mrb[9].mxu0  ;;  %v1606_v29 = vpop.f32.mrb[9].mxu1 }
 0x10b   : > { %v1535_v30 = vadd.f32 %v1534_v28, %v1533_v26  ;;  %v1536_v31 = vpop.f32.mrb[10].mxu0  ;;  %v1948_v32 = vadd.f32 %v1606_v29, %v1605_v27  ;;  %v1608_v33 = vpop.f32.mrb[10].mxu1 }
 0x10c   : > { %v1537_v34 = vpop.f32.mrb[11].mxu0  ;;  %v1609_v35 = vpop.f32.mrb[11].mxu1 }
 0x10d   : > { %v1538_v36 = vadd.f32 %v1537_v34, %v1536_v31  ;;  %v1950_v37 = vadd.f32 %v1609_v35, %v1608_v33  ;;  %v733_v16 = vadd.f32 %v1535_v30, %v1959_v50 }
 0x10f   : > { %v736_v27 = vadd.f32 %v1538_v36, %v1959_v50 }
 0x111   : > { %v1539_v38 = vpop.f32.mrb[12].mxu0  ;;  %v1611_v39 = vpop.f32.mrb[12].mxu1 }
 0x112   : > { %v1540_v40 = vpop.f32.mrb[13].mxu0  ;;  %v1612_v41 = vpop.f32.mrb[13].mxu1 }
 0x113   : > { %v1541_v42 = vadd.f32 %v1540_v40, %v1539_v38  ;;  %v1542_v43 = vpop.f32.mrb[14].mxu0  ;;  %v1952_v44 = vadd.f32 %v1612_v41, %v1611_v39  ;;  %v1614_v45 = vpop.f32.mrb[14].mxu1 }
 0x114   : > { %v1543_v46 = vpop.f32.mrb[15].mxu0  ;;  %v1615_v47 = vpop.f32.mrb[15].mxu1 }
 0x115   : > { %v1544_v48 = vadd.f32 %v1543_v46, %v1542_v43  ;;  %v1954_v49 = vadd.f32 %v1615_v47, %v1614_v45  ;;  %v741_v11 = vadd.f32 %v1541_v42, %v1959_v50 }
 0x117   : > { %v744_v21 = vadd.f32 %v1544_v48, %v1959_v50 }
 0x119   : > { %v1545_v52 = vpop.f32.mrb[16].mxu0  ;;  %v1641_v53 = vpop.f32.mrb[16].mxu1 }
 0x11a   : > { %v886_v55 = vadd.f32 %v1641_v53, %v725_v51  ;;  %v1546_v56 = vpop.f32.mrb[17].mxu0  ;;  %v877_v57 = vpop.f32.mrb[17].mxu1 }
 0x11b   : > { %v1547_v59 = vadd.f32 %v1546_v56, %v1545_v52  ;;  %v878_v60 = vadd.f32 %v877_v57, %v717_v54  ;;  %v1548_v61 = vpop.f32.mrb[18].mxu0  ;;  %v1642_v62 = vpop.f32.mrb[18].mxu1 }
 0x11c   : > { %v889_v0 = vadd.f32 %v1642_v62, %v728_v58  ;;  %v1549_v1 = vpop.f32.mrb[19].mxu0  ;;  %v880_v2 = vpop.f32.mrb[19].mxu1  ;;  %v1006_v5 = vmax.f32 %v886_v55, 0.0 }
 0x11d   : > { %v1550_v3 = vadd.f32 %v1549_v1, %v1548_v61  ;;  %v881_v4 = vadd.f32 %v880_v2, %v720_v63  ;;  %v1004_v6 = vmax.f32 %v878_v60, 0.0  ;;  %v749_v46 = vadd.f32 %v1547_v59, %v1959_v50 }
 0x11e   : > { %v1007_v7 = vmax.f32 %v889_v0, 0.0 }
 0x11f   : > { %v1005_v9 = vmax.f32 %v881_v4, 0.0  ;;  %v752_v56 = vadd.f32 %v1550_v3, %v1959_v50 }
 0x120   : > { %v1418_v10 = vpack.c.bf16 %v1007_v7, %v1006_v5 }
 0x121   : > { %v1413_v12 = vpack.c.bf16 %v1005_v9, %v1004_v6  ;;  %v1551_v14 = vpop.f32.mrb[20].mxu0  ;;  %v1645_v15 = vpop.f32.mrb[20].mxu1 }
 0x122   : > { %1490 = vst [vmem:[%s1969_s8 + $0x8] sm:$0xff] %v1418_v10   ;;  %v902_v17 = vadd.f32 %v1645_v15, %v741_v11  ;;  %v1552_v18 = vpop.f32.mrb[21].mxu0  ;;  %v893_v19 = vpop.f32.mrb[21].mxu1 }
 0x123   : > { %1414 = vst [vmem:[%s1969_s8] sm:$0xff] %v1413_v12   ;;  %v1553_v22 = vadd.f32 %v1552_v18, %v1551_v14  ;;  %v894_v23 = vadd.f32 %v893_v19, %v733_v16  ;;  %v1554_v24 = vpop.f32.mrb[22].mxu0  ;;  %v1646_v26 = vpop.f32.mrb[22].mxu1 }
 0x124   : > { %v905_v28 = vadd.f32 %v1646_v26, %v744_v21  ;;  %v1555_v29 = vpop.f32.mrb[23].mxu0  ;;  %v896_v31 = vpop.f32.mrb[23].mxu1  ;;  %v1010_v30 = vmax.f32 %v902_v17, 0.0 }
 0x125   : > { %v1556_v33 = vadd.f32 %v1555_v29, %v1554_v24  ;;  %v897_v34 = vadd.f32 %v896_v31, %v736_v27  ;;  %v1008_v38 = vmax.f32 %v894_v23, 0.0  ;;  %v757_v41 = vadd.f32 %v1553_v22, %v1959_v50 }
 0x126   : > { %v1011_v35 = vmax.f32 %v905_v28, 0.0 }
 0x127   : > { %v1009_v39 = vmax.f32 %v897_v34, 0.0  ;;  %v760_v51 = vadd.f32 %v1556_v33, %v1959_v50 }
 0x128   : > { %v1428_v40 = vpack.c.bf16 %v1011_v35, %v1010_v30 }
 0x129   : > { %v1423_v42 = vpack.c.bf16 %v1009_v39, %v1008_v38  ;;  %v1557_v43 = vpop.f32.mrb[24].mxu0  ;;  %v1649_v45 = vpop.f32.mrb[24].mxu1 }
 0x12a   : > { %1492 = vst [vmem:[%s1969_s8 + $0x18] sm:$0xff] %v1428_v40   ;;  %v918_v36 = vadd.f32 %v1649_v45, %v757_v41  ;;  %v1558_v47 = vpop.f32.mrb[25].mxu0  ;;  %v909_v48 = vpop.f32.mrb[25].mxu1 }
 0x12b   : > { %1491 = vst [vmem:[%s1969_s8 + $0x10] sm:$0xff] %v1423_v42   ;;  %v1559_v52 = vadd.f32 %v1558_v47, %v1557_v43  ;;  %v910_v53 = vadd.f32 %v909_v48, %v749_v46  ;;  %v1560_v54 = vpop.f32.mrb[26].mxu0  ;;  %v1650_v55 = vpop.f32.mrb[26].mxu1 }
 0x12c   : > { %v921_v57 = vadd.f32 %v1650_v55, %v760_v51  ;;  %v1561_v58 = vpop.f32.mrb[27].mxu0  ;;  %v912_v60 = vpop.f32.mrb[27].mxu1  ;;  %v1014_v62 = vmax.f32 %v918_v36, 0.0 }
 0x12d   : > { %v1562_v61 = vadd.f32 %v1561_v58, %v1560_v54  ;;  %v913_v59 = vadd.f32 %v912_v60, %v752_v56  ;;  %v1012_v0 = vmax.f32 %v910_v53, 0.0  ;;  %v765_v6 = vadd.f32 %v1559_v52, %v1959_v50 }
 0x12e   : > { %v1015_v63 = vmax.f32 %v921_v57, 0.0 }
 0x12f   : > { %v1013_v1 = vmax.f32 %v913_v59, 0.0  ;;  %v768_v15 = vadd.f32 %v1562_v61, %v1959_v50 }
 0x130   : > { %v1438_v2 = vpack.c.bf16 %v1015_v63, %v1014_v62 }
 0x131   : > { %v1433_v4 = vpack.c.bf16 %v1013_v1, %v1012_v0  ;;  %v1563_v5 = vpop.f32.mrb[28].mxu0  ;;  %v1653_v7 = vpop.f32.mrb[28].mxu1 }
 0x132   : > { %1494 = vst [vmem:[%s1969_s8 + $0x28] sm:$0xff] %v1438_v2   ;;  %v1564_v9 = vpop.f32.mrb[29].mxu0  ;;  %v925_v10 = vpop.f32.mrb[29].mxu1 }
 0x133   : > { %1493 = vst [vmem:[%s1969_s8 + $0x20] sm:$0xff] %v1433_v4   ;;  %v1565_v3 = vadd.f32 %v1564_v9, %v1563_v5  ;;  %v926_v11 = vadd.f32 %v925_v10, %v765_v6  ;;  %v1566_v12 = vpop.f32.mrb[30].mxu0  ;;  %v1654_v14 = vpop.f32.mrb[30].mxu1  ;;  %v821_v4 = vadd.f32 %v1944_v20, %v1959_v50  ;;  %v813_v9 = vadd.f32 %v1940_v8, %v1959_v50 }
 0x134   : > { %v1567_v16 = vpop.f32.mrb[31].mxu0  ;;  %v928_v17 = vpop.f32.mrb[31].mxu1 }
 0x135   : > { %v773_v18 = vadd.f32 %v1565_v3, %v1959_v50  ;;  %v1568_v19 = vadd.f32 %v1567_v16, %v1566_v12  ;;  %v929_v21 = vadd.f32 %v928_v17, %v768_v15  ;;  %v1016_v23 = vmax.f32 %v926_v11, 0.0 }
 0x136   : > { %v824_v12 = vadd.f32 %v1946_v25, %v1959_v50 }
 0x137   : > { %v934_v22 = vadd.f32 %v1653_v7, %v773_v18  ;;  %v776_v24 = vadd.f32 %v1568_v19, %v1959_v50  ;;  %v1017_v26 = vmax.f32 %v929_v21, 0.0 }
 0x139   : > { %v937_v27 = vadd.f32 %v1654_v14, %v776_v24  ;;  %v1443_v28 = vpack.c.bf16 %v1017_v26, %v1016_v23  ;;  %v1569_v29 = vpop.f32.mrb[32].mxu0  ;;  %v1657_v31 = vpop.f32.mrb[32].mxu1  ;;  %v1018_v30 = vmax.f32 %v934_v22, 0.0  ;;  %v816_v22 = vadd.f32 %v1942_v13, %v1959_v50 }
 0x13a   : > { %v1570_v33 = vpop.f32.mrb[33].mxu0  ;;  %v941_v34 = vpop.f32.mrb[33].mxu1 }
 0x13b   : > { %v1019_v35 = vmax.f32 %v937_v27, 0.0  ;;  %1495 = vst [vmem:[%s1969_s8 + $0x30] sm:$0xff] %v1443_v28   ;;  %v1571_v38 = vadd.f32 %v1570_v33, %v1569_v29  ;;  %v1572_v39 = vpop.f32.mrb[34].mxu0  ;;  %v1658_v40 = vpop.f32.mrb[34].mxu1 }
 0x13c   : > { %v1573_v41 = vpop.f32.mrb[35].mxu0  ;;  %v944_v42 = vpop.f32.mrb[35].mxu1 }
 0x13d   : > { %v1448_v43 = vpack.c.bf16 %v1019_v35, %v1018_v30  ;;  %v781_v45 = vadd.f32 %v1571_v38, %v1959_v50  ;;  %v1574_v46 = vadd.f32 %v1573_v41, %v1572_v39  ;;  %v837_v35 = vadd.f32 %v1952_v44, %v1959_v50 }
 0x13f   : > { %1496 = vst [vmem:[%s1969_s8 + $0x38] sm:$0xff] %v1448_v43   ;;  %v942_v36 = vadd.f32 %v941_v34, %v781_v45  ;;  %v784_v47 = vadd.f32 %v1574_v46, %v1959_v50  ;;  %v840_v46 = vadd.f32 %v1954_v49, %v1959_v50 }
 0x141   : > { %v945_v48 = vadd.f32 %v944_v42, %v784_v47  ;;  %v1575_v51 = vpop.f32.mrb[36].mxu0  ;;  %v1993_v52 = vpop.f32.mrb[36].mxu1  ;;  %v1020_v55 = vmax.f32 %v942_v36, 0.0 }
 0x142   : > { %v1576_v53 = vpop.f32.mrb[37].mxu0  ;;  %v957_v54 = vpop.f32.mrb[37].mxu1 }
 0x143   : > { %v1021_v56 = vmax.f32 %v945_v48, 0.0  ;;  %v1577_v57 = vadd.f32 %v1576_v53, %v1575_v51  ;;  %v1578_v58 = vpop.f32.mrb[38].mxu0  ;;  %v1995_v60 = vpop.f32.mrb[38].mxu1 }
 0x144   : > { %v1579_v61 = vpop.f32.mrb[39].mxu0  ;;  %v960_v59 = vpop.f32.mrb[39].mxu1 }
 0x145   : > { %v1453_v62 = vpack.c.bf16 %v1021_v56, %v1020_v55  ;;  %v789_v63 = vadd.f32 %v1577_v57, %v1959_v50  ;;  %v1580_v0 = vadd.f32 %v1579_v61, %v1578_v58 }
 0x147   : > { %1497 = vst [vmem:[%s1969_s8 + $0x40] sm:$0xff] %v1453_v62   ;;  %v950_v1 = vadd.f32 %v1657_v31, %v789_v63  ;;  %v792_v2 = vadd.f32 %v1580_v0, %v1959_v50 }
 0x149   : > { %v953_v5 = vadd.f32 %v1658_v40, %v792_v2  ;;  %v1581_v7 = vpop.f32.mrb[40].mxu0  ;;  %v1665_v6 = vpop.f32.mrb[40].mxu1  ;;  %v1022_v14 = vmax.f32 %v950_v1, 0.0  ;;  %v829_v40 = vadd.f32 %v1948_v32, %v1959_v50  ;;  %v832_v32 = vadd.f32 %v1950_v37, %v1959_v50 }
 0x14a   : > { %v982_v10 = vadd.f32 %v1665_v6, %v821_v4  ;;  %v1582_v3 = vpop.f32.mrb[41].mxu0  ;;  %v973_v11 = vpop.f32.mrb[41].mxu1 }
 0x14b   : > { %v1023_v15 = vmax.f32 %v953_v5, 0.0  ;;  %v1583_v16 = vadd.f32 %v1582_v3, %v1581_v7  ;;  %v974_v17 = vadd.f32 %v973_v11, %v813_v9  ;;  %v1584_v18 = vpop.f32.mrb[42].mxu0  ;;  %v1666_v19 = vpop.f32.mrb[42].mxu1 }
 0x14c   : > { %v985_v20 = vadd.f32 %v1666_v19, %v824_v12  ;;  %v1585_v21 = vpop.f32.mrb[43].mxu0  ;;  %v976_v23 = vpop.f32.mrb[43].mxu1  ;;  %v1030_v27 = vmax.f32 %v982_v10, 0.0 }
 0x14d   : > { %v1458_v8 = vpack.c.bf16 %v1023_v15, %v1022_v14  ;;  %v797_v24 = vadd.f32 %v1583_v16, %v1959_v50  ;;  %v1586_v26 = vadd.f32 %v1585_v21, %v1584_v18  ;;  %v977_v28 = vadd.f32 %v976_v23, %v816_v22 }
 0x14e   : > { %v1031_v25 = vmax.f32 %v985_v20, 0.0  ;;  %v1028_v33 = vmax.f32 %v974_v17, 0.0 }
 0x14f   : > { %1498 = vst [vmem:[%s1969_s8 + $0x48] sm:$0xff] %v1458_v8   ;;  %v958_v29 = vadd.f32 %v957_v54, %v797_v24  ;;  %v800_v31 = vadd.f32 %v1586_v26, %v1959_v50  ;;  %v1029_v30 = vmax.f32 %v977_v28, 0.0 }
 0x150   : > { %v1478_v34 = vpack.c.bf16 %v1031_v25, %v1030_v27 }
 0x151   : > { %v961_v13 = vadd.f32 %v960_v59, %v800_v31  ;;  %v1587_v38 = vpop.f32.mrb[44].mxu0  ;;  %v1669_v39 = vpop.f32.mrb[44].mxu1  ;;  %v1473_v41 = vpack.c.bf16 %v1029_v30, %v1028_v33  ;;  %v1024_v36 = vmax.f32 %v958_v29, 0.0 }
 0x152   : > { %1502 = vst [vmem:[%s1969_s8 + $0x68] sm:$0xff] %v1478_v34   ;;  %v998_v42 = vadd.f32 %v1669_v39, %v837_v35  ;;  %v1588_v43 = vpop.f32.mrb[45].mxu0  ;;  %v989_v45 = vpop.f32.mrb[45].mxu1 }
 0x153   : > { %v1025_v47 = vmax.f32 %v961_v13, 0.0  ;;  %v1589_v48 = vadd.f32 %v1588_v43, %v1587_v38  ;;  %v990_v44 = vadd.f32 %v989_v45, %v829_v40  ;;  %v1590_v51 = vpop.f32.mrb[46].mxu0  ;;  %v1670_v53 = vpop.f32.mrb[46].mxu1  ;;  %1501 = vst [vmem:[%s1969_s8 + $0x60] sm:$0xff] %v1473_v41  }
 0x154   : > { %v1001_v54 = vadd.f32 %v1670_v53, %v840_v46  ;;  %v1591_v55 = vpop.f32.mrb[47].mxu0  ;;  %v992_v56 = vpop.f32.mrb[47].mxu1  ;;  %v1034_v61 = vmax.f32 %v998_v42, 0.0 }
 0x155   : > { %v1463_v57 = vpack.c.bf16 %v1025_v47, %v1024_v36  ;;  %v805_v58 = vadd.f32 %v1589_v48, %v1959_v50  ;;  %v1592_v49 = vadd.f32 %v1591_v55, %v1590_v51  ;;  %v993_v62 = vadd.f32 %v992_v56, %v832_v32 }
 0x156   : > { %v1035_v59 = vmax.f32 %v1001_v54, 0.0  ;;  %v1032_v1 = vmax.f32 %v990_v44, 0.0 }
 0x157   : > { %1499 = vst [vmem:[%s1969_s8 + $0x50] sm:$0xff] %v1463_v57   ;;  %v966_v63 = vadd.f32 %v1993_v52, %v805_v58  ;;  %v808_v0 = vadd.f32 %v1592_v49, %v1959_v50  ;;  %v1033_v4 = vmax.f32 %v993_v62, 0.0 }
 0x158   : > { %v1488_v2 = vpack.c.bf16 %v1035_v59, %v1034_v61 }
 0x159   : > { %v969_v37 = vadd.f32 %v1995_v60, %v808_v0  ;;  %v1483_v5 = vpack.c.bf16 %v1033_v4, %v1032_v1  ;;  %v1026_v7 = vmax.f32 %v966_v63, 0.0 }
 0x15a   : > { %1504 = vst [vmem:[%s1969_s8 + $0x78] sm:$0xff] %v1488_v2  }
 0x15b   : > { %v1027_v6 = vmax.f32 %v969_v37, 0.0  ;;  %1503 = vst [vmem:[%s1969_s8 + $0x70] sm:$0xff] %v1483_v5  }
 0x15d   : > { %v1468_v9 = vpack.c.bf16 %v1027_v6, %v1026_v7 }
 0x15f   : > { %1500 = vst [vmem:[%s1969_s8 + $0x58] sm:$0xff] %v1468_v9  }
 0x160 PF: > { %s13_s12 = sadd.s32 1, %s1784_s12  }
 0x161   : > { %p10_p4 = scmp.ge.s32.totalorder %s13_s12, 4  }
 0x163   :  { %12 = sbr.rel (!%p10_p4) target bundleno = 1 (0x1), region = 62 }

</bundles_post_ra>
